<compile_context>
chip_gen: v5e
topology: v5e:2x2
jax: 0.10.0
libtpu: 0.0.40
codegen_flags: <defaults>
</compile_context>

<pallas_src>
import jax
import jax.numpy as jnp
from jax.experimental import pallas as pl
from jax.experimental.pallas import tpu as pltpu


def _lora_merged_kernel(x_ref, a_ref, b_ref, q_ref, v_ref):
    """One (TM, H) row tile of the merged LoRA q/v projection.

    Stage 1 (fused):  t   = x @ [Aq^T | Av^T]                -> (TM, 2r) f32
    Stage 2 (fused):  out = t @ [[s*Bq^T, 0], [0, s*Bv^T]]   -> (TM, 2H) f32
    q = out[:, :H], v = out[:, H:]  (128-aligned column halves, free slices).
    """
    H = q_ref.shape[1]

    x = x_ref[...]                                   # native dtype -> MXU
    t = jnp.dot(x, a_ref[...], preferred_element_type=jnp.float32)        # (TM, 2r)
    # Cast the tiny rank-r activations back to the native dtype so stage 2
    # also uses the native-dtype MXU path (no-op for f32 inputs).
    out = jnp.dot(t.astype(x_ref.dtype), b_ref[...],
                  preferred_element_type=jnp.float32)                     # (TM, 2H)
    out = out.astype(q_ref.dtype)

    q_ref[...] = out[:, :H]
    v_ref[...] = out[:, H:]


def _vmem_budget_bytes():
    """Per-TensorCore VMEM budget for the kernel (conservative headroom)."""
    try:
        info = pltpu.get_tpu_info()
        cap = getattr(info, "vmem_capacity_bytes", None)
        if cap:
            # ~70% of reported VMEM, hard-capped at 45 MiB: even if the query
            # returns a per-chip number on v7x (2 TCs sharing 2 x 64 MiB) this
            # never over-commits a single TensorCore's 64 MiB.
            return int(min(0.7 * cap, 45 * 2**20))
    except Exception:
        pass
    return 32 * 2**20  # safe default (scoped-VMEM style budget)


def _pick_tm(M, H, r, itemsize, vmem_budget):
    """Largest row tile whose full working set (streams + f32 temps) fits."""
    # Sublane packing per dtype: f32 -> 8, bf16 -> 16, int8/fp8 -> 32.
    row_mult = {4: 8, 2: 16, 1: 32}.get(itemsize, 8)

    # VMEM-resident weights (single-buffered): A_cat (H, 2r) + B_cat (2r, 2H).
    weights_bytes = 6 * r * H * itemsize
    slack = 2 * 2**20                                # compiler/internal scratch
    avail = max(vmem_budget - weights_bytes - slack, 1 << 20)

    # Per streamed row: double-buffered x/q/v tiles (6*H*itemsize) PLUS the
    # transient f32 accumulators of stage 1 (2r*4) and stage 2 (2H*4).
    per_row = 6 * H * itemsize + 8 * H + 8 * r
    tm = int(avail // per_row)
    tm = max(min(tm, 1024), row_mult)

    # Never emit a (near-)1-step grid: keep >= ~4 steps so the DMA pipeline
    # overlaps and v7x can shard the "parallel" row axis across both cores.
    tm = min(tm, max(-(-M // 4), row_mult))

    # Round to MXU / sublane-friendly multiples.
    if tm >= 256:
        tm = (tm // 256) * 256
    else:
        tm = max((tm // row_mult) * row_mult, row_mult)
    return int(tm)


def lora_layer_merged(x, a_q, b_q, a_v, b_v, scaling):
    """x: (B, S, H); a_*: (r, H); b_*: (H, r). Returns (q, v), each (B, S, H)."""
    B, S, H = x.shape
    M = B * S
    r = a_q.shape[0]
    dt = x.dtype
    itemsize = jnp.dtype(dt).itemsize
    x2d = x.reshape(M, H)

    # --- One-time weight prep (hoisted out of the hot loop in deployment) ---
    # Stage 1: A_cat = [Aq^T | Av^T]                         (H, 2r)
    # Stage 2: B_cat = [[s*Bq^T, 0], [0, s*Bv^T]]            (2r, 2H)
    # scaling is folded into the tiny B weights; everything is cast to x.dtype
    # so the in-kernel matmuls never silently promote to a multi-pass f32 path.
    f32 = jnp.float32
    a_cat = jnp.concatenate([a_q.T, a_v.T], axis=1).astype(dt)            # (H, 2r)
    bq_s = (b_q.astype(f32).T * f32(scaling)).astype(dt)                  # (r, H)
    bv_s = (b_v.astype(f32).T * f32(scaling)).astype(dt)                  # (r, H)
    zero = jnp.zeros((r, H), dtype=dt)
    b_cat = jnp.concatenate(
        [jnp.concatenate([bq_s, zero], axis=1),
         jnp.concatenate([zero, bv_s], axis=1)], axis=0)                  # (2r, 2H)

    vmem_budget = _vmem_budget_bytes()
    tm = _pick_tm(M, H, r, itemsize, vmem_budget)

    grid_m = -(-M // tm)
    m_pad = grid_m * tm
    if m_pad != M:
        x2d = jnp.pad(x2d, ((0, m_pad - M), (0, 0)))

    flops = 12 * M * H * r                               # 2 fused rank-r GEMM stages
    bytes_accessed = (3 * M * H + 6 * r * H) * itemsize  # x,q,v streams + weights

    grid_spec = pltpu.PrefetchScalarGridSpec(
        num_scalar_prefetch=0,
        grid=(grid_m,),
        in_specs=[
            # x row tile: streamed, default double-buffered.
            pl.BlockSpec((tm, H), lambda i: (i, 0)),
            # Resident fused weights: constant block -> single buffer.
            pl.BlockSpec((H, 2 * r), lambda i: (0, 0),
                         pipeline_mode=pl.Buffered(1)),
            pl.BlockSpec((2 * r, 2 * H), lambda i: (0, 0),
                         pipeline_mode=pl.Buffered(1)),
        ],
        out_specs=(
            pl.BlockSpec((tm, H), lambda i: (i, 0)),     # q row tile
            pl.BlockSpec((tm, H), lambda i: (i, 0)),     # v row tile
        ),
    )

    q2d, v2d = pl.pallas_call(
        _lora_merged_kernel,
        out_shape=(
            jax.ShapeDtypeStruct((m_pad, H), dt),
            jax.ShapeDtypeStruct((m_pad, H), dt),
        ),
        grid_spec=grid_spec,
        compiler_params=pltpu.CompilerParams(
            dimension_semantics=("parallel",),           # shards rows across TCs on v7x
            vmem_limit_bytes=vmem_budget,
        ),
        cost_estimate=pl.CostEstimate(
            flops=flops,
            transcendentals=0,
            bytes_accessed=bytes_accessed,
        ),
    )(x2d, a_cat, b_cat)

    if m_pad != M:
        q2d = q2d[:M]
        v2d = v2d[:M]
    return q2d.reshape(B, S, H), v2d.reshape(B, S, H)


if __name__ == "__main__":
    # Small deterministic example: batch=2, seq=8, hidden=32, lora rank r=4.
    batch, seq, hidden, rank = 2, 8, 32, 4
    scaling = 0.5

    key = jax.random.PRNGKey(0)
    kx, kaq, kbq, kav, kbv = jax.random.split(key, 5)

    x = jax.random.normal(kx, (batch, seq, hidden), dtype=jnp.float32)
    a_q = jax.random.normal(kaq, (rank, hidden), dtype=jnp.float32) * 0.1
    b_q = jax.random.normal(kbq, (hidden, rank), dtype=jnp.float32) * 0.1
    a_v = jax.random.normal(kav, (rank, hidden), dtype=jnp.float32) * 0.1
    b_v = jax.random.normal(kbv, (hidden, rank), dtype=jnp.float32) * 0.1

    q, v = lora_layer_merged(x, a_q, b_q, a_v, b_v, scaling)
    jax.block_until_ready((q, v))

    # Pure-JAX reference for sanity (matches the PyTorch forward).
    ref_q = (x @ a_q.T @ b_q.T) * scaling
    ref_v = (x @ a_v.T @ b_v.T) * scaling
    assert jnp.allclose(q, ref_q, atol=1e-5, rtol=1e-5)
    assert jnp.allclose(v, ref_v, atol=1e-5, rtol=1e-5)

    print("KERNEL_OK")
</pallas_src>

<mosaic_0001>
module attributes {stable_mosaic.version = 11 : i64} {
  func.func @_lora_merged_kernel(%arg0: i32, %arg1: memref<8x32xf32, #tpu.memory_space<vmem>>, %arg2: memref<32x8xf32, #tpu.memory_space<vmem>>, %arg3: memref<8x64xf32, #tpu.memory_space<vmem>>, %arg4: memref<8x32xf32, #tpu.memory_space<vmem>>, %arg5: memref<8x32xf32, #tpu.memory_space<vmem>>) attributes {dimension_semantics = [#tpu.dimension_semantics<parallel>], iteration_bounds = array<i64: 2>, scalar_prefetch = 0 : i64, scratch_operands = 0 : i64, tpu.core_type = #tpu.core_type<tc>, window_params = [{transform_indices = @transform_0, window_bounds = array<i64: 8, 32>}, {pipeline_mode = #tpu.pipeline_mode<synchronous>, transform_indices = @transform_1, window_bounds = array<i64: 32, 8>}, {pipeline_mode = #tpu.pipeline_mode<synchronous>, transform_indices = @transform_2, window_bounds = array<i64: 8, 64>}, {transform_indices = @transform_3, window_bounds = array<i64: 8, 32>}, {transform_indices = @transform_4, window_bounds = array<i64: 8, 32>}]} {
    %c0 = arith.constant 0 : index
    %c0_0 = arith.constant 0 : index
    %0 = vector.load %arg1[%c0, %c0_0] : memref<8x32xf32, #tpu.memory_space<vmem>>, vector<8x32xf32>
    %c0_1 = arith.constant 0 : index
    %c0_2 = arith.constant 0 : index
    %1 = vector.load %arg2[%c0_1, %c0_2] : memref<32x8xf32, #tpu.memory_space<vmem>>, vector<32x8xf32>
    %cst = arith.constant dense<0.000000e+00> : vector<8x8xf32>
    %2 = tpu.matmul %0, %1, %cst {dimension_numbers = #tpu.dot_dimension_numbers<[1], [0], [0], [1], [0, 0, 1, 1], [], []>} : vector<8x32xf32>, vector<32x8xf32>, vector<8x8xf32> -> vector<8x8xf32>
    %c0_3 = arith.constant 0 : index
    %c0_4 = arith.constant 0 : index
    %3 = vector.load %arg3[%c0_3, %c0_4] : memref<8x64xf32, #tpu.memory_space<vmem>>, vector<8x64xf32>
    %cst_5 = arith.constant dense<0.000000e+00> : vector<8x64xf32>
    %4 = tpu.matmul %2, %3, %cst_5 {dimension_numbers = #tpu.dot_dimension_numbers<[1], [0], [0], [1], [0, 0, 1, 1], [], []>} : vector<8x8xf32>, vector<8x64xf32>, vector<8x64xf32> -> vector<8x64xf32>
    %5 = vector.extract_strided_slice %4 {offsets = [0, 0], sizes = [8, 32], strides = [1, 1]} : vector<8x64xf32> to vector<8x32xf32>
    %c0_6 = arith.constant 0 : index
    %c0_7 = arith.constant 0 : index
    %6 = vector.load %arg4[%c0_6, %c0_7] : memref<8x32xf32, #tpu.memory_space<vmem>>, vector<8x32xf32>
    tpu.vector_store %arg4[%c0_6, %c0_7], %5 {strides = array<i32>} : memref<8x32xf32, #tpu.memory_space<vmem>>, vector<8x32xf32>,
    %7 = vector.extract_strided_slice %4 {offsets = [0, 32], sizes = [8, 32], strides = [1, 1]} : vector<8x64xf32> to vector<8x32xf32>
    %c0_8 = arith.constant 0 : index
    %c0_9 = arith.constant 0 : index
    %8 = vector.load %arg5[%c0_8, %c0_9] : memref<8x32xf32, #tpu.memory_space<vmem>>, vector<8x32xf32>
    tpu.vector_store %arg5[%c0_8, %c0_9], %7 {strides = array<i32>} : memref<8x32xf32, #tpu.memory_space<vmem>>, vector<8x32xf32>,
    return
  }
  func.func @transform_0(%arg0: i32) -> (i32, i32) {
    %c0_i32 = arith.constant 0 : i32
    %c0_i32_0 = arith.constant 0 : i32
    return %arg0, %c0_i32 : i32, i32
  }
  func.func @transform_1(%arg0: i32) -> (i32, i32) {
    %c0_i32 = arith.constant 0 : i32
    %c0_i32_0 = arith.constant 0 : i32
    %c0_i32_1 = arith.constant 0 : i32
    return %c0_i32, %c0_i32_0 : i32, i32
  }
  func.func @transform_2(%arg0: i32) -> (i32, i32) {
    %c0_i32 = arith.constant 0 : i32
    %c0_i32_0 = arith.constant 0 : i32
    %c0_i32_1 = arith.constant 0 : i32
    return %c0_i32, %c0_i32_0 : i32, i32
  }
  func.func @transform_3(%arg0: i32) -> (i32, i32) {
    %c0_i32 = arith.constant 0 : i32
    %c0_i32_0 = arith.constant 0 : i32
    return %arg0, %c0_i32 : i32, i32
  }
  func.func @transform_4(%arg0: i32) -> (i32, i32) {
    %c0_i32 = arith.constant 0 : i32
    %c0_i32_0 = arith.constant 0 : i32
    return %arg0, %c0_i32 : i32, i32
  }
}

</mosaic_0001>

<bundles_post_ra>
// kernel: tpu_custom_call.1
= control target key start
LH: loop header
LB: loop body
LE: loop exit
PB: predicated region body
PF: predicated region fallthrough
CT: control target
= control target key end

     0   :  { %10 = vsyncpa [#allocation3], 0  ;;  %s694_s0 = inlined_call_operand.vmem [shape: f32[16,32], index: 0, kind: input, shape index: {}]   ;;  %s695_s1 = inlined_call_operand.vmem [shape: f32[32,8], index: 1, kind: input, shape index: {}]   ;;  %s696_s2 = inlined_call_operand.vmem [shape: f32[8,64], index: 2, kind: input, shape index: {}]   ;;  %s697_s3 = inlined_call_operand.hbm [shape: f32[16,32], index: 3, kind: output, shape index: {0}]   ;;  %s698_s4 = inlined_call_operand.hbm [shape: f32[16,32], index: 4, kind: output, shape index: {1}]  }
   0x1   :  { %12 = vsyncpa [#allocation3 + $0x1], 0 }
   0x2   :  { %13 = vsyncpa [#allocation5], 0 }
   0x3   :  { %15 = vsyncpa [#allocation5 + $0x1], 0  ;;  %s573_s15 = smov 0   ;;  %s575_s16 = smov 0  }
   0x4   :  { %s577_s17 = smov 0   ;;  %s579_s18 = smov 0  }
   0x5 LB: > { %s594_s19 = sadd.s32 4294967295, %s545_s18   ;;  %s391_s20 = sadd.s32 4294967294, %s545_s18   ;;  %s545_s18 = sphi %s579_s18, %s704_s18   ;;  %s541_s17 = sphi %s577_s17, %s703_s17   ;;  %s537_s16 = sphi %s575_s16, %s702_s16   ;;  %s533_s15 = sphi %s573_s15, %s701_s15  }
   0x6   : > { %s598_s21 = sadd.s32 1, %s545_s18   ;;  %s96_s22 = sadd.s32 1, %s541_s17 }
   0x7   : > { %s93_s23 = ssub.s32 %s545_s18, %s598_s21  ;;  %p106_p0 = scmp.ne.s32.totalorder %s541_s17, %s537_s16 }
   0x8   : > { %p94_p1 = scmp.eq.s32.totalorder %s93_s23, 0  ;;  %p107_p2 = scmp.eq.s32.totalorder %s594_s19, 1 }
   0x9   : > { %p112_p3 = scmp.ne.s32.totalorder %s537_s16, %s533_s15  ;;  %p113_p4 = scmp.eq.s32.totalorder %s391_s20, 1 }
   0xa   : > { %s609_s24 = scalar_select %p94_p1, %s541_s17, %s96_s22  }
   0xb   : > { %p611_p5 = por %p107_p2, %p106_p0  ;;  %p615_p6 = por %p113_p4, %p112_p3 }
   0xc   : > { %p394_p7 = scmp.ge.s32.totalorder %s545_s18, 1  ;;  %p170_p8 = scmp.lt.s32.totalorder %s545_s18, 3 }
   0xe   : > { %p171_p9 = pnand %p394_p7, %p170_p8 }
   0xf   : > { %p200_p10 = scmp.lt.s32.totalorder (!%p171_p9), %s594_s19, 1  ;;  %s643_s22 = sand.u32 (!%p171_p9), 1, %s537_s16  }
  0x10   : > { %174 = sbr.rel (%p171_p9) target bundleno = 399 (0x18f), region = 32  ;;  %s402_s23 = sshll.u32 (!%p171_p9), %s594_s19, 3 }
  0x11   : > { %s395_s27 = sshll.u32 (!%p171_p9), %s643_s22, 3  ;;  %s280_s30 = scalar_lea.hbm (!%p171_p9), %s697_s3, %s402_s23 }
  0x12   : > { %s192_s5 = scalar_lea.vmem (!%p171_p9), [#allocation2], %s395_s27  ;;  %s547_s8 = smov (!%p171_p9), 96  }
  0x13   : > { %s282_s6 = sshll.u32 (!%p171_p9), %s192_s5, 4  ;;  %s265_s9 = scalar_lea.sflag (!%p171_p9), [#allocation3], %s643_s22  ;;  %s283_s6 = int_to_ptr.vmem [resolvable:$true] %s282_s6 }
  0x15   : > { %v208_v0 = vld [vmem:[%s695_s1 + $0x18] sm:$0xff]  ;;  %v207_v1 = vld [vmem:[%s695_s1 + $0x10] sm:$0xff]  ;;  %v206_v2 = vld [vmem:[%s695_s1 + $0x8] sm:$0xff]  ;;  %s201_s7 = scalar_select %p200_p10, %s594_s19, 1  ;;  %vm209_vm0 = vcmask 261120   ;;  %vm234_vm1 = vcmask 64512  }
  0x16   : > { %225 = vmatpush.msra.mxu0 %v208_v0  ;;  %v205_v3 = vld [vmem:[%s695_s1] sm:$0xff] }
  0x17   : > { %s397_s10 = sshll.u32 %s201_s7, 3  ;;  %v233_v5 = vld [vmem:[%s696_s2] sm:$0xff]  ;;  %s284_s7 = sshll.u32 %s280_s30, 4  ;;  %s285_s7 = int_to_ptr.hbm [resolvable:$true] %s284_s7 }
  0x18   : > { %226 = vmatpush.msra.mxu0 %v207_v1  ;;  %s203_s13 = scalar_lea.vmem %s694_s0, %s397_s10  ;;  %253 = vmatpush.msra.mxu1 %v233_v5  ;;  %s465_s10 = sshra.s32 %s285_s7, 4  ;;  %s466_s10 = int_to_ptr.hbm [resolvable:$true] %s465_s10 }
  0x19   : > { %v204_v4 = vld [vmem:[%s203_s13] sm:$0xff]  ;;  %s467_s19 = scalar_lea.hbm %s466_s10, 8  ;;  %s471_s13 = scalar_lea.hbm %s697_s3, 16 }
  0x1a   : > { %227 = vmatpush.msra.mxu0 %v206_v2  ;;  %p468_p11 = scmp.ne.s32.totalorder %s466_s10, %s467_s19  ;;  %p472_p0 = scmp.lt.s32.totalorder %s466_s10, %s697_s3 }
  0x1b   : > { %p473_p1 = scmp.lt.s32.totalorder %s471_s13, %s467_s19 }
  0x1c   : > { %228 = vmatpush.msra.mxu0 %v205_v3  ;;  %p469_p12 = pnand %p468_p11, %p611_p5 }
  0x1d   : > { %398 = vmatmul.msk.f32.vlgmr.msra.gmra.mxu0 %vm209_vm0, %v204_v4  ;;  %p474_p2 = por %p473_p1, %p472_p0 }
  0x1e   : > { %p470_p13 = pneg %p469_p12 }
  0x20   : > { %p475_p3 = pnand %p474_p2, %p470_p13 }
  0x9a   : > { %v230_v6 = vpop.f32.mrf.mxu0 }
  0x9b   : > { %399 = vmatmul.msk.f32.vlgmr.msra.gmra.mxu1 %vm234_vm1, %v230_v6 }
 0x118   : > { %v255_v7 = vpop.f32.mrf.mxu1 }
 0x119   : > { %258 = vst.msk [vmem:[%s192_s5] sm:$0xff] %vm209_vm0, %v255_v7  ;;  %260 = vrot.lane.b32.xlu0 %v255_v7, %s547_s8 }
 0x11a   : > { %478 = shalt.err (!%p475_p3)
}
 0x11b   : > { %406 = dma.vmem_to_hbm [thread:$0]  (%p611_p5), %s283_s6, 128, %s285_s7, %s265_s9  }
 0x11c   : > { %s294_s30 = scalar_lea.hbm %s698_s4, %s402_s23  ;;  %s199_s5 = scalar_lea.vmem [#allocation4], %s395_s27 }
 0x11d   : > { %s296_s8 = sshll.u32 %s199_s5, 4  ;;  %s298_s11 = sshll.u32 %s294_s30, 4  ;;  %s297_s8 = int_to_ptr.vmem [resolvable:$true] %s296_s8  ;;  %s299_s11 = int_to_ptr.hbm [resolvable:$true] %s298_s11 }
 0x11e   : > { %s270_s10 = scalar_lea.sflag [#allocation5], %s643_s22  ;;  %s493_s19 = sshra.s32 %s299_s11, 4  ;;  %s494_s19 = int_to_ptr.hbm [resolvable:$true] %s493_s19 }
 0x11f   : > { %s495_s12 = scalar_lea.hbm %s494_s19, 8  ;;  %s499_s23 = scalar_lea.hbm %s698_s4, 16 }
 0x120   : > { %p496_p4 = scmp.ne.s32.totalorder %s494_s19, %s495_s12  ;;  %p500_p9 = scmp.lt.s32.totalorder %s494_s19, %s698_s4 }
 0x121   : > { %p501_p10 = scmp.lt.s32.totalorder %s499_s23, %s495_s12 }
 0x122   : > { %p497_p7 = pnand %p496_p4, %p611_p5 }
 0x123   : > { %p502_p11 = por %p501_p10, %p500_p9 }
 0x124   : > { %p498_p8 = pneg %p497_p7 }
 0x126   : > { %p503_p12 = pnand %p502_p11, %p498_p8 }
 0x18b   : > { %v261_v8 = vpop.permute.xlu0 %260 }
 0x18c   : > { %263 = vst.msk [vmem:[%s199_s5] sm:$0xff] %vm209_vm0, %v261_v8 }
 0x18d   : > { %506 = shalt.err (!%p503_p12)
}
 0x18e   : > { %407 = dma.vmem_to_hbm [thread:$0]  (%p611_p5), %s297_s8, 128, %s299_s11, %s270_s10  }
 0x18f PF: > { %p417_p13 = scmp.ge.s32.totalorder %s545_s18, 2  ;;  %s310_s22 = sand.u32 1, %s533_s15  }
 0x190   : > { %s311_s13 = scalar_lea.sflag [#allocation3], %s310_s22 }
 0x191   : > { %p411_p0 = pnand %p417_p13, %p615_p6 }
 0x193   : > { %p412_p1 = pneg %p411_p0 }
 0x195   : > { %524 = dma.done.wait (%p412_p1), %s311_s13, 128  }
 0x196   : > { %526 = vsyncadd (%p412_p1), %s311_s13, 4294967168  ;;  %s321_s14 = scalar_lea.sflag [#allocation5], %s310_s22 }
 0x197   : > { %528 = dma.done.wait (%p412_p1), %s321_s14, 128  }
 0x198   : > { %530 = vsyncadd (%p412_p1), %s321_s14, 4294967168  ;;  %p18_p5 = scmp.ge.s32.totalorder %s598_s21, 4   ;;  %s701_s15 = smov %s537_s16 }
 0x199   : > { %s702_s16 = smov %s541_s17  ;;  %s703_s17 = smov %s609_s24 }
 0x19a   : > { %s704_s18 = smov %s598_s21  ;;  %20 = sbr.rel (!%p18_p5) target bundleno = 5 (0x5), region = 84 }
 0x19f   :  { %327 = vsyncpa [#allocation3], 1 }
 0x1a0   :  { %329 = vsyncpa [#allocation3 + $0x1], 1 }
 0x1a1   :  { %330 = vsyncpa [#allocation5], 1 }
 0x1a2   :  { %332 = vsyncpa [#allocation5 + $0x1], 1 }

</bundles_post_ra>
